<compile_context>
chip_gen: v5e
topology: v5e:2x2
jax: 0.10.0
libtpu: 0.0.40
codegen_flags: <defaults>
</compile_context>

<pallas_src>
import jax
import jax.numpy as jnp
from jax.experimental import pallas as pl
from jax.experimental.pallas import tpu as pltpu


def _const_input_kernel(const_ref, o_ref):
    """One grid step == Bt batch elements.

    const_ref: (1, 1, N)   learned constant, lane-dense (VMEM, fetched once)
    o_ref:     (1, Bt, N)  output slab for Bt batch elements (VMEM)
    """
    # Sublane-broadcast the single const row across the Bt batch rows.
    o_ref[...] = jnp.broadcast_to(const_ref[...], o_ref.shape)


def _pick_batch_tile(B, per_elem_bytes, target_block_bytes):
    """Largest divisor Bt of B such that
       * the output block is <= target_block_bytes, and
       * there are >= 2 grid steps when B >= 2 (v7x megacore split)."""
    max_by_bytes = max(1, target_block_bytes // max(1, per_elem_bytes))
    max_by_steps = B if B < 2 else max(1, B // 2)
    cap = min(max_by_bytes, max_by_steps)
    bt = 1
    for d in range(1, B + 1):
        if B % d == 0 and d <= cap:
            bt = d
    return bt


def const_input_forward(x, const, *, target_block_bytes=4 * 1024 * 1024):
    """Forward of ConstInput: repeat `const` along the batch dim of `x`.

    x:     (B, ...)          only x.shape[0] is used (matches x.size(0)).
    const: (1, C, H, W)      learned constant parameter.
    returns (B, C, H, W), dtype of `const`.
    """
    B = x.shape[0]
    one, C, H, W = const.shape
    assert one == 1, const.shape

    N = C * H * W                      # full-extent lane dim (no padding)
    itemsize = jnp.dtype(const.dtype).itemsize
    per_elem_bytes = N * itemsize

    Bt = _pick_batch_tile(B, per_elem_bytes, target_block_bytes)
    G = B // Bt                         # grid steps (>= 2 when B >= 2)

    out_block_bytes = Bt * per_elem_bytes
    const_bytes = per_elem_bytes
    # Double-buffered output + double-buffered const + margin; never below the
    # 32 MiB scoped default so v5e's 16 MiB default never forces tile shrink.
    vmem_limit = max(32 * 1024 * 1024,
                     2 * out_block_bytes + 2 * const_bytes + (2 << 20))

    # Metadata-only views: (1,C,H,W) -> (1,1,N) and (G,Bt,N) -> (B,C,H,W).
    const_flat = const.reshape(1, 1, N)

    out = pl.pallas_call(
        _const_input_kernel,
        out_shape=jax.ShapeDtypeStruct((G, Bt, N), const.dtype),
        grid=(G,),
        in_specs=[
            # Constant index_map -> fetched from HBM exactly once.
            pl.BlockSpec((1, 1, N), lambda g: (0, 0, 0)),
        ],
        out_specs=pl.BlockSpec((1, Bt, N), lambda g: (g, 0, 0)),
        compiler_params=pltpu.CompilerParams(
            dimension_semantics=("parallel",),   # megacore batch split on v7x
            vmem_limit_bytes=int(vmem_limit),
        ),
    )(const_flat)

    return out.reshape(B, C, H, W)


def _reference(x, const):
    """Pure-JAX reference replicating ConstInput.forward."""
    B = x.shape[0]
    return jnp.broadcast_to(const, (B,) + const.shape[1:])


if __name__ == "__main__":
    key = jax.random.PRNGKey(0)

    # Spec-sized case: batch=2, channels=4, spatial=16  (Bt=1, G=2).
    B, C, S = 2, 4, 16
    kc, kx, kc2, kx2 = jax.random.split(key, 4)
    const = jax.random.normal(kc, (1, C, S, S), dtype=jnp.float32)   # nn.Parameter
    x = jax.random.normal(kx, (B, C, S, S), dtype=jnp.float32)       # only B is used

    out = jax.block_until_ready(const_input_forward(x, const))
    ref = jax.block_until_ready(_reference(x, const))
    assert out.shape == (B, C, S, S), out.shape
    assert jnp.array_equal(out, ref), float(jnp.max(jnp.abs(out - ref)))

    # Larger batch to exercise the multi-batch (Bt > 1) block path.
    B2 = 8
    const2 = jax.random.normal(kc2, (1, C, S, S), dtype=jnp.float32)
    x2 = jax.random.normal(kx2, (B2, C, S, S), dtype=jnp.float32)
    out2 = jax.block_until_ready(const_input_forward(x2, const2))
    ref2 = jax.block_until_ready(_reference(x2, const2))
    assert out2.shape == (B2, C, S, S), out2.shape
    assert jnp.array_equal(out2, ref2), float(jnp.max(jnp.abs(out2 - ref2)))

    print("KERNEL_OK")
</pallas_src>

<mosaic_0001>
module attributes {stable_mosaic.version = 11 : i64} {
  func.func @_const_input_kernel(%arg0: i32, %arg1: memref<1x1x1024xf32, #tpu.memory_space<vmem>>, %arg2: memref<1x1x1024xf32, #tpu.memory_space<vmem>>) attributes {dimension_semantics = [#tpu.dimension_semantics<parallel>], iteration_bounds = array<i64: 2>, scalar_prefetch = 0 : i64, scratch_operands = 0 : i64, tpu.core_type = #tpu.core_type<tc>, window_params = [{pipeline_mode = #tpu.pipeline_mode<synchronous>, transform_indices = @transform_0, window_bounds = array<i64: 1, 1, 1024>}, {transform_indices = @transform_1, window_bounds = array<i64: 1, 1, 1024>}]} {
    %c0 = arith.constant 0 : index
    %c0_0 = arith.constant 0 : index
    %c0_1 = arith.constant 0 : index
    %0 = vector.load %arg1[%c0, %c0_0, %c0_1] : memref<1x1x1024xf32, #tpu.memory_space<vmem>>, vector<1x1x1024xf32>
    %c0_2 = arith.constant 0 : index
    %c0_3 = arith.constant 0 : index
    %c0_4 = arith.constant 0 : index
    %1 = vector.load %arg2[%c0_2, %c0_3, %c0_4] : memref<1x1x1024xf32, #tpu.memory_space<vmem>>, vector<1x1x1024xf32>
    tpu.vector_store %arg2[%c0_2, %c0_3, %c0_4], %0 {strides = array<i32>} : memref<1x1x1024xf32, #tpu.memory_space<vmem>>, vector<1x1x1024xf32>,
    return
  }
  func.func @transform_0(%arg0: i32) -> (i32, i32, i32) {
    %c0_i32 = arith.constant 0 : i32
    %c0_i32_0 = arith.constant 0 : i32
    %c0_i32_1 = arith.constant 0 : i32
    %c0_i32_2 = arith.constant 0 : i32
    return %c0_i32, %c0_i32_0, %c0_i32_1 : i32, i32, i32
  }
  func.func @transform_1(%arg0: i32) -> (i32, i32, i32) {
    %c0_i32 = arith.constant 0 : i32
    %c0_i32_0 = arith.constant 0 : i32
    %c0_i32_1 = arith.constant 0 : i32
    return %arg0, %c0_i32, %c0_i32_0 : i32, i32, i32
  }
}

</mosaic_0001>

<bundles_post_ra>
// kernel: tpu_custom_call.1
= control target key start
LH: loop header
LB: loop body
LE: loop exit
PB: predicated region body
PF: predicated region fallthrough
CT: control target
= control target key end

     0   :  { %6 = vsyncpa [#allocation3], 0  ;;  %s440_s0 = inlined_call_operand.hbm [shape: f32[1,1,1024], index: 0, kind: input, shape index: {}]   ;;  %s441_s1 = inlined_call_operand.hbm [shape: f32[2,1,1024], index: 1, kind: output, shape index: {}]  }
   0x1   :  { %7 = vsyncpa [#allocation4], 0 }
   0x2   :  { %9 = vsyncpa [#allocation4 + $0x1], 0  ;;  %s356_s6 = smov 0   ;;  %s358_s7 = smov 0  }
   0x3   :  { %s360_s8 = smov 0   ;;  %s362_s9 = smov 0  }
   0x4 LB: > { %s377_s10 = sadd.s32 4294967295, %s343_s9   ;;  %s187_s11 = sadd.s32 4294967294, %s343_s9   ;;  %s343_s9 = sphi %s362_s9, %s447_s9   ;;  %s339_s8 = sphi %s360_s8, %s446_s8   ;;  %s335_s7 = sphi %s358_s7, %s445_s7   ;;  %s331_s6 = sphi %s356_s6, %s444_s6  }
   0x5   : > { %s381_s12 = sadd.s32 1, %s343_s9   ;;  %s43_s13 = sadd.s32 1, %s339_s8 }
   0x6   : > { %s40_s14 = ssub.s32 %s343_s9, %s381_s12  ;;  %p53_p0 = scmp.ne.s32.totalorder %s339_s8, %s335_s7 }
   0x7   : > { %p41_p1 = scmp.eq.s32.totalorder %s40_s14, 0  ;;  %p54_p2 = scmp.eq.s32.totalorder %s377_s10, 1 }
   0x8   : > { %p59_p3 = scmp.ne.s32.totalorder %s335_s7, %s331_s6  ;;  %p60_p4 = scmp.eq.s32.totalorder %s187_s11, 1 }
   0x9   : > { %s392_s15 = scalar_select %p41_p1, %s339_s8, %s43_s13  }
   0xa   : > { %p394_p5 = por %p54_p2, %p53_p0  ;;  %p398_p6 = por %p60_p4, %p59_p3 }
   0xb   : > { %p188_p7 = scmp.ge.s32.totalorder %s343_s9, 1  ;;  %p67_p8 = scmp.lt.s32.totalorder %s343_s9, 3 }
   0xc   : > { %p211_p9 = scmp.eq.s32.totalorder %s377_s10, 0  ;;  %s79_s20 = sshll.u32 %s440_s0, 4  ;;  %s80_s20 = int_to_ptr.hbm [resolvable:$true] %s79_s20 }
   0xd   : > { %p68_p10 = pnand %p188_p7, %p67_p8  ;;  %s345_s21 = smov [#allocation2]  }
   0xe   : > { %s81_s22 = sshll.u32 %s345_s21, 4  ;;  %s82_s22 = int_to_ptr.vmem [resolvable:$true] %s81_s22 }
   0xf   : > { %p203_p11 = pneg %p68_p10  ;;  %94 = sbr.rel (%p68_p10) target bundleno = 37 (0x25), region = 24 }
  0x11   : > { %p204_p12 = pnand %p211_p9, %p203_p11 }
  0x13   : > { %206 = dma.hbm_to_vmem [thread:$0]  (!%p204_p12), %s80_s20, 128, %s82_s22, [#allocation3]  }
  0x14   : > { %322 = dma.done.wait (%p211_p9), [#allocation3], 128  }
  0x15   : > { %324 = vsyncadd (%p211_p9), [#allocation3], 4294967168  ;;  %s107_s23 = sand.u32 1, %s335_s7   ;;  %s194_s24 = sshll.u32 %s377_s10, 3  ;;  %v110_v0 = vld [vmem:[#allocation2] sm:$0xff] }
  0x16   : > { %s192_s25 = sshll.u32 %s107_s23, 3  ;;  %s123_s28 = scalar_lea.hbm %s441_s1, %s194_s24 }
  0x17   : > { %s109_s29 = scalar_lea.vmem [#allocation5], %s192_s25  ;;  %s127_s2 = sshll.u32 %s123_s28, 4  ;;  %s128_s2 = int_to_ptr.hbm [resolvable:$true] %s127_s2 }
  0x18   : > { %s125_s30 = sshll.u32 %s109_s29, 4  ;;  %111 = vst [vmem:[%s109_s29] sm:$0xff] %v110_v0  ;;  %s113_s3 = scalar_lea.sflag [#allocation4], %s107_s23  ;;  %s126_s30 = int_to_ptr.vmem [resolvable:$true] %s125_s30 }
  0x19   : > { %s291_s4 = sshra.s32 %s128_s2, 4  ;;  %s297_s13 = scalar_lea.hbm %s441_s1, 16  ;;  %s292_s4 = int_to_ptr.hbm [resolvable:$true] %s291_s4 }
  0x1a   : > { %s293_s5 = scalar_lea.hbm %s292_s4, 8  ;;  %p298_p2 = scmp.lt.s32.totalorder %s292_s4, %s441_s1 }
  0x1b   : > { %p294_p13 = scmp.ne.s32.totalorder %s292_s4, %s293_s5  ;;  %p299_p3 = scmp.lt.s32.totalorder %s297_s13, %s293_s5 }
  0x1d   : > { %p295_p0 = pnand %p294_p13, %p394_p5  ;;  %p300_p4 = por %p299_p3, %p298_p2 }
  0x1f   : > { %p296_p1 = pneg %p295_p0 }
  0x21   : > { %p301_p7 = pnand %p300_p4, %p296_p1 }
  0x23   : > { %304 = shalt.err (!%p301_p7)
}
  0x24   : > { %201 = dma.vmem_to_hbm [thread:$0]  (%p394_p5), %s126_s30, 128, %s128_s2, %s113_s3  }
  0x25 PF: > { %p213_p8 = scmp.ge.s32.totalorder %s343_s9, 2  ;;  %s139_s19 = sand.u32 1, %s331_s6  }
  0x26   : > { %s140_s20 = scalar_lea.sflag [#allocation4], %s139_s19 }
  0x27   : > { %p208_p9 = pnand %p213_p8, %p398_p6 }
  0x29   : > { %p209_p10 = pneg %p208_p9 }
  0x2b   : > { %326 = dma.done.wait (%p209_p10), %s140_s20, 128  }
  0x2c   : > { %328 = vsyncadd (%p209_p10), %s140_s20, 4294967168  ;;  %p12_p11 = scmp.ge.s32.totalorder %s381_s12, 4   ;;  %s444_s6 = smov %s335_s7 }
  0x2d   : > { %s445_s7 = smov %s339_s8  ;;  %s446_s8 = smov %s392_s15 }
  0x2e   : > { %s447_s9 = smov %s381_s12  ;;  %14 = sbr.rel (!%p12_p11) target bundleno = 4 (0x4), region = 61 }
  0x33   :  { %146 = vsyncpa [#allocation3], 1 }
  0x34   :  { %148 = vsyncpa [#allocation3 + $0x1], 1 }
  0x35   :  { %149 = vsyncpa [#allocation4], 1 }
  0x36   :  { %151 = vsyncpa [#allocation4 + $0x1], 1 }

</bundles_post_ra>
